<compile_context>
chip_gen: v7x
topology: tpu7x:2x2x1
jax: 0.10.0
libtpu: 0.0.40
codegen_flags: <defaults>
</compile_context>

<pallas_src>
import math

import jax
import jax.numpy as jnp
from jax.experimental import pallas as pl
from jax.experimental.pallas import tpu as pltpu


def _pair(v):
    if isinstance(v, (tuple, list)):
        return tuple(v)
    return (v, v)


def _sublane_multiple(dtype):
    # Sub-32-bit dtypes pack along sublanes: f32/i32 -> 8, bf16 -> 16, int8 -> 32.
    itemsize = jnp.dtype(dtype).itemsize
    return max(8, 8 * (4 // max(1, itemsize)))


def _tiled_slice_bytes(h, w, hp, wp, dtype):
    """VMEM bytes one (h,w) input + (hp,wp) output slice really occupies after
    (sublane, 128)-lane layout padding (logical bytes undercount by ~7-9x for
    small W)."""
    itemsize = jnp.dtype(dtype).itemsize
    sub = _sublane_multiple(dtype)

    def tiled(rows, cols):
        rr = -(-rows // sub) * sub
        cc = -(-cols // 128) * 128
        return rr * cc * itemsize

    return tiled(h, w) + tiled(hp, wp)


def _vmem_budgets():
    """Returns (per-block double-buffered budget, vmem_limit_bytes, min_steps)."""
    cap = None
    try:
        cap = pltpu.get_tpu_info().vmem_capacity_bytes
    except Exception:
        cap = None
    if cap is not None and cap >= 96 * 1024 * 1024:
        # v5e / v6e: 128 MiB physical VMEM, 1 TensorCore -> big blocks, few steps.
        return 48 * 1024 * 1024, 100 * 1024 * 1024, 1
    # v7x (64 MiB physical, 2 TensorCores) or unknown hardware: stay OOM-safe,
    # but keep >= 2 grid steps so the 'parallel' axis can shard across cores.
    return 20 * 1024 * 1024, 48 * 1024 * 1024, 2


def _pick_batch_block(nc, slice_tiled_bytes, block_budget, min_steps):
    """Largest tb whose double-buffered in+out blocks fit the budget.

    No divisor constraint: the grid uses pl.cdiv and the ragged tail block is
    clipped by Pallas, so tb stays near the VMEM cap for any nc.
    """
    cap = max(1, block_budget // (2 * slice_tiled_bytes))  # 2x: double buffering
    if nc >= min_steps:
        cap = min(cap, pl.cdiv(nc, min_steps))
    return max(1, min(cap, nc))


def _make_pad_kernel(pad_top, pad_bottom, pad_left, pad_right, h, w):
    hp = h + pad_top + pad_bottom
    wp = w + pad_left + pad_right

    def kernel(x_ref, o_ref):
        tb = o_ref.shape[0]
        dt = o_ref.dtype
        # Every output element is written exactly once.
        # Top / bottom zero strips: full-lane-width stores.
        if pad_top:
            o_ref[:, 0:pad_top, :] = jnp.zeros((tb, pad_top, wp), dt)
        if pad_bottom:
            o_ref[:, pad_top + h:hp, :] = jnp.zeros((tb, pad_bottom, wp), dt)
        # Middle band: ONE full-lane-width store; left/right zero columns are
        # concatenated in-register instead of emitting 1-lane masked stores
        # plus a lane-offset interior store.
        parts = []
        if pad_left:
            parts.append(jnp.zeros((tb, h, pad_left), dt))
        parts.append(x_ref[...])
        if pad_right:
            parts.append(jnp.zeros((tb, h, pad_right), dt))
        mid = parts[0] if len(parts) == 1 else jnp.concatenate(parts, axis=2)
        o_ref[:, pad_top:pad_top + h, :] = mid

    return kernel


def same_pad_2d(x, kernel_size, stride):
    """Exact reproduction of the PyTorch SamePad2d.forward semantics (NCHW)."""
    ksize = _pair(kernel_size)
    strd = _pair(stride)
    n, c, h, w = x.shape

    # --- reproduce the (quirky) PyTorch math exactly ----------------------
    # NOTE: the reference swaps axis names (in_width = size()[2] = H,
    # in_height = size()[3] = W), so kernel_size[0]/stride[0] pair with the H
    # axis while the resulting pad_left/right land on the W axis (F.pad pads
    # the last dim with (pad_left, pad_right)).  Kept bit-exact on purpose;
    # for non-square kernels/strides this differs from true TF 'SAME'.
    in_width = h   # input.size()[2]
    in_height = w  # input.size()[3]
    out_width = math.ceil(float(in_width) / float(strd[0]))
    out_height = math.ceil(float(in_height) / float(strd[1]))
    pad_along_width = (out_width - 1) * strd[0] + ksize[0] - in_width
    pad_along_height = (out_height - 1) * strd[1] + ksize[1] - in_height
    pad_left = math.floor(pad_along_width / 2)
    pad_top = math.floor(pad_along_height / 2)
    pad_right = pad_along_width - pad_left
    pad_bottom = pad_along_height - pad_top
    # TODO(synk): negative padding (crop case, stride > kernel) not handled in-kernel.
    assert min(pad_left, pad_right, pad_top, pad_bottom) >= 0

    hp = h + pad_top + pad_bottom
    wp = w + pad_left + pad_right

    nc = n * c
    x_flat = x.reshape(nc, h, w)

    block_budget, vmem_limit, min_steps = _vmem_budgets()
    slice_bytes = _tiled_slice_bytes(h, w, hp, wp, x.dtype)
    tb = _pick_batch_block(nc, slice_bytes, block_budget, min_steps)
    grid = (pl.cdiv(nc, tb),)

    kernel = _make_pad_kernel(pad_top, pad_bottom, pad_left, pad_right, h, w)

    itemsize = jnp.dtype(x.dtype).itemsize
    cost = pl.CostEstimate(
        flops=0,
        transcendentals=0,
        bytes_accessed=nc * (h * w + hp * wp) * itemsize,
    )

    out_flat = pl.pallas_call(
        kernel,
        out_shape=jax.ShapeDtypeStruct((nc, hp, wp), x.dtype),
        grid_spec=pltpu.PrefetchScalarGridSpec(
            num_scalar_prefetch=0,
            grid=grid,
            in_specs=[pl.BlockSpec((tb, h, w), lambda i: (i, 0, 0))],
            out_specs=pl.BlockSpec((tb, hp, wp), lambda i: (i, 0, 0)),
        ),
        compiler_params=pltpu.CompilerParams(
            dimension_semantics=("parallel",),
            vmem_limit_bytes=vmem_limit,
        ),
        cost_estimate=cost,
    )(x_flat)

    return out_flat.reshape(n, c, hp, wp)


if __name__ == "__main__":
    key = jax.random.PRNGKey(0)
    x = jax.random.normal(key, (2, 4, 16, 16), dtype=jnp.float32)

    # Case 1: kernel=3, stride=1 -> symmetric pad of 1 on every side.
    out = same_pad_2d(x, 3, 1)
    out = jax.block_until_ready(out)
    ref = jnp.pad(x, ((0, 0), (0, 0), (1, 1), (1, 1)))
    assert out.shape == (2, 4, 18, 18), out.shape
    assert jnp.allclose(out, ref), "mismatch vs reference padding (k=3, s=1)"

    # Case 2: kernel=3, stride=2 -> asymmetric pad (0 before, 1 after) on H and W.
    out2 = same_pad_2d(x, 3, 2)
    out2 = jax.block_until_ready(out2)
    ref2 = jnp.pad(x, ((0, 0), (0, 0), (0, 1), (0, 1)))
    assert out2.shape == (2, 4, 17, 17), out2.shape
    assert jnp.allclose(out2, ref2), "mismatch vs reference padding (k=3, s=2)"

    print("KERNEL_OK")
</pallas_src>

<mosaic_0001>
module attributes {stable_mosaic.version = 11 : i64} {
  func.func @kernel(%arg0: i32, %arg1: memref<4x16x16xf32, #tpu.memory_space<vmem>>, %arg2: memref<4x18x18xf32, #tpu.memory_space<vmem>>) attributes {dimension_semantics = [#tpu.dimension_semantics<parallel>], iteration_bounds = array<i64: 2>, scalar_prefetch = 0 : i64, scratch_operands = 0 : i64, tpu.core_type = #tpu.core_type<tc>, window_params = [{transform_indices = @transform_0, window_bounds = array<i64: 4, 16, 16>}, {transform_indices = @transform_1, window_bounds = array<i64: 4, 18, 18>}]} {
    %cst = arith.constant 0.000000e+00 : f32
    %0 = vector.broadcast %cst : f32 to vector<4x1x18xf32>
    %c0 = arith.constant 0 : index
    %c0_0 = arith.constant 0 : index
    %c0_1 = arith.constant 0 : index
    %1 = vector.load %arg2[%c0, %c0_0, %c0_1] : memref<4x18x18xf32, #tpu.memory_space<vmem>>, vector<4x1x18xf32>
    tpu.vector_store %arg2[%c0, %c0_0, %c0_1], %0 {strides = array<i32>} : memref<4x18x18xf32, #tpu.memory_space<vmem>>, vector<4x1x18xf32>,
    %cst_2 = arith.constant 0.000000e+00 : f32
    %2 = vector.broadcast %cst_2 : f32 to vector<4x1x18xf32>
    %c0_3 = arith.constant 0 : index
    %c17 = arith.constant 17 : index
    %c0_4 = arith.constant 0 : index
    %3 = vector.load %arg2[%c0_3, %c17, %c0_4] : memref<4x18x18xf32, #tpu.memory_space<vmem>>, vector<4x1x18xf32>
    tpu.vector_store %arg2[%c0_3, %c17, %c0_4], %2 {strides = array<i32>} : memref<4x18x18xf32, #tpu.memory_space<vmem>>, vector<4x1x18xf32>,
    %cst_5 = arith.constant 0.000000e+00 : f32
    %4 = vector.broadcast %cst_5 : f32 to vector<4x16x1xf32>
    %c0_6 = arith.constant 0 : index
    %c0_7 = arith.constant 0 : index
    %c0_8 = arith.constant 0 : index
    %5 = vector.load %arg1[%c0_6, %c0_7, %c0_8] : memref<4x16x16xf32, #tpu.memory_space<vmem>>, vector<4x16x16xf32>
    %cst_9 = arith.constant 0.000000e+00 : f32
    %6 = vector.broadcast %cst_9 : f32 to vector<4x16x1xf32>
    %7 = tpu.concatenate %4, %5, %6 in 2 : vector<4x16x1xf32>, vector<4x16x16xf32>, vector<4x16x1xf32> -> vector<4x16x18xf32>
    %c0_10 = arith.constant 0 : index
    %c1 = arith.constant 1 : index
    %c0_11 = arith.constant 0 : index
    %8 = vector.load %arg2[%c0_10, %c1, %c0_11] : memref<4x18x18xf32, #tpu.memory_space<vmem>>, vector<4x16x18xf32>
    tpu.vector_store %arg2[%c0_10, %c1, %c0_11], %7 {strides = array<i32>} : memref<4x18x18xf32, #tpu.memory_space<vmem>>, vector<4x16x18xf32>,
    return
  }
  func.func @transform_0(%arg0: i32) -> (i32, i32, i32) {
    %c0_i32 = arith.constant 0 : i32
    %c0_i32_0 = arith.constant 0 : i32
    %c0_i32_1 = arith.constant 0 : i32
    return %arg0, %c0_i32, %c0_i32_0 : i32, i32, i32
  }
  func.func @transform_1(%arg0: i32) -> (i32, i32, i32) {
    %c0_i32 = arith.constant 0 : i32
    %c0_i32_0 = arith.constant 0 : i32
    %c0_i32_1 = arith.constant 0 : i32
    return %arg0, %c0_i32, %c0_i32_0 : i32, i32, i32
  }
}

</mosaic_0001>

<bundles_post_ra>
// kernel: tpu_custom_call.1
= control target key start
LH: loop header
LB: loop body
LE: loop exit
PB: predicated region body
PF: predicated region fallthrough
CT: control target
= control target key end

     0   :  { %6 = vsyncpa [#allocation3], 0  ;;  %s595_s0 = inlined_call_operand.hbm [shape: f32[8,16,16], index: 0, kind: input, shape index: {}]   ;;  %s596_s1 = inlined_call_operand.vmem [shape: f32[8,18,18], index: 1, kind: output, shape index: {}]  }
   0x1   :  { %8 = vsyncpa [#allocation3 + $0x1], 0  ;;  %s428_s6 = smov 0   ;;  %s430_s7 = smov 0  }
   0x2   :  { %s432_s8 = smov 0   ;;  %s434_s9 = smov 0  }
   0x3 LB: > { %s287_s10 = sadd.s32 4294967295, %s411_s9   ;;  %s448_s11 = sadd.s32 1, %s411_s9   ;;  %s411_s9 = sphi %s434_s9, %s603_s9   ;;  %s407_s8 = sphi %s432_s8, %s602_s8   ;;  %s403_s7 = sphi %s430_s7, %s601_s7   ;;  %s399_s6 = sphi %s428_s6, %s600_s6  }
   0x4   : > { %s18_s12 = ssub.s32 %s411_s9, %s448_s11  ;;  %s21_s13 = sadd.s32 1, %s407_s8 }
   0x5   : > { %p19_p0 = scmp.eq.s32.totalorder %s18_s12, 0  ;;  %p28_p1 = scmp.ne.s32.totalorder %s407_s8, %s403_s7 }
   0x6   : > { %p29_p2 = scmp.eq.s32.totalorder %s411_s9, 0  ;;  %p34_p3 = scmp.ne.s32.totalorder %s403_s7, %s399_s6 }
   0x7   : > { %s458_s14 = scalar_select %p19_p0, %s407_s8, %s21_s13  }
   0x8   : > { %p30_p4 = por %p29_p2, %p28_p1  ;;  %p35_p5 = scmp.eq.s32.totalorder %s287_s10, 0 }
   0x9   : > { %p310_p6 = scmp.lt.s32.totalorder %s411_s9, 2  ;;  %s84_s16 = sand.u32 1, %s407_s8  }
   0xa   : > { %p463_p7 = por %p35_p5, %p34_p3  ;;  %s291_s17 = sshll.u32 %s84_s16, 6 }
   0xb   : > { %s302_s18 = sshll.u32 %s411_s9, 10  ;;  %s88_s22 = scalar_lea.vmem [#allocation2], %s291_s17 }
   0xc   : > { %s472_s21 = scalar_lea.hbm %s595_s0, %s302_s18  ;;  %s96_s23 = sshll.u32 %s88_s22, 4  ;;  %s474_s23 = int_to_ptr.vmem [resolvable:$true] %s96_s23 }
   0xd   : > { %p476_p8 = pnand %p310_p6, %p30_p4  ;;  %s481_s25 = scalar_lea.sflag [#allocation3], %s84_s16 }
   0xe   : > { %s347_s26 = scalar_lea.hbm %s472_s21, 1024  ;;  %s352_s29 = scalar_lea.hbm %s595_s0, 2048 }
   0xf   : > { %p348_p10 = scmp.ne.s32.totalorder %s472_s21, %s347_s26  ;;  %p349_p11 = pneg %p476_p8 }
  0x10   : > { %p353_p0 = scmp.lt.u32.totalorder %s472_s21, %s595_s0  ;;  %p354_p1 = scmp.lt.u32.totalorder %s352_s29, %s347_s26 }
  0x11   : > { %p350_p12 = pnand %p349_p11, %p348_p10  ;;  %p356_p3 = scmp.lt.u32.totalorder %s347_s26, %s472_s21 }
  0x12   : > { %p355_p2 = por %p354_p1, %p353_p0 }
  0x13   : > { %p351_p13 = pneg %p350_p12 }
  0x14   : > { %p357_p4 = por %p356_p3, %p355_p2 }
  0x16   : > { %p358_p5 = pnand %p357_p4, %p351_p13 }
  0x18   : > { %361 = shalt.err (!%p358_p5)
}
  0x19   : > { %s362_s3 = scalar_lea.vmem %s474_s23, 1024  ;;  %s413_s4 = smov [#allocation2]  }
  0x1a   : > { %p363_p6 = scmp.ne.s32.totalorder %s474_s23, %s362_s3  ;;  %s367_s5 = sshll.u32 %s413_s4, 4  ;;  %s368_s5 = int_to_ptr.vmem [resolvable:$false] %s367_s5 }
  0x1b   : > { %s369_s6 = scalar_lea.vmem %s368_s5, 2048  ;;  %p370_p9 = scmp.lt.s32.totalorder %s474_s23, %s368_s5 }
  0x1c   : > { %p365_p10 = pnand %p363_p6, %p349_p11  ;;  %p371_p0 = scmp.lt.s32.totalorder %s369_s6, %s362_s3 }
  0x1e   : > { %p366_p12 = pneg %p365_p10  ;;  %p372_p1 = por %p371_p0, %p370_p9 }
  0x20   : > { %p373_p2 = pnand %p372_p1, %p366_p12 }
  0x22   : > { %376 = shalt.err (!%p373_p2)
}
  0x23   : > { %s414_s12 = smov 128   ;;  %s415_s13 = smov 8  }
  0x24   : > { %309 = dma.hbm_to_vmem [thread:$0]  (!%p476_p8), %s472_s21, 1024, %s474_s23, %s481_s25, %s414_s12, %s414_s12, %s415_s13  }
  0x25   : > { %p104_p11 = scmp.lt.s32.totalorder %s411_s9, 3  ;;  %p599_p13 = scmp.ge.s32.totalorder %s411_s9, 1 }
  0x27   : > { %p105_p3 = pnand %p599_p13, %p104_p11 }
  0x28   : > { %s110_s16 = sand.u32 (!%p105_p3), 1, %s403_s7  }
  0x29   : > { %108 = sbr.rel (%p105_p3) target bundleno = 180 (0xb4), region = 24  ;;  %s296_s17 = sshll.u32 (!%p105_p3), %s110_s16, 6 }
  0x2a   : > { %s111_s18 = scalar_lea.sflag (!%p105_p3), [#allocation3], %s110_s16  ;;  %s513_s19 = scalar_lea.vmem (!%p105_p3), [#allocation2], %s296_s17 }
  0x30   : > { %394 = dma.done.wait (%p463_p7), %s111_s18, 1024  }
  0x31   : > { %396 = vsyncadd (%p463_p7), %s111_s18, 4294966272  ;;  %s297_s20 = sshll.u32 %s287_s10, 2  ;;  %vm142_vm0 = vcmask 139264   ;;  %v153_v0 = vld [vmem:[%s513_s19 + $0x10] sm:$0xff]  ;;  %v151_v1 = vld [vmem:[%s513_s19] sm:$0xff]  ;;  %s416_s9 = smov 1  }
  0x32   : > { %p136_p8 = scmp.lt.s32.totalorder %s297_s20, 7  ;;  %171 = vrot.lane.b32.xlu1 %v153_v0, %s416_s9  ;;  %167 = vrot.lane.b32.xlu0 %v151_v1, %s416_s9  ;;  %v417_v2 = vmov 0.0   ;;  %v154_v3 = vld [vmem:[%s513_s19 + $0x18] sm:$0xff]  ;;  %v152_v4 = vld [vmem:[%s513_s19 + $0x8] sm:$0xff]  ;;  %vm191_vm1 = vcmask 7168   ;;  %vm200_vm2 = vcmask 138240  }
  0x33   : > { %v156_v5 = vld [vmem:[%s513_s19 + $0x28] sm:$0xff]  ;;  %v155_v6 = vld [vmem:[%s513_s19 + $0x20] sm:$0xff]  ;;  %v158_v7 = vld [vmem:[%s513_s19 + $0x38] sm:$0xff]  ;;  %vm209_vm3 = vcmask 146432  }
  0x34   : > { %s605_s20 = smov (!%p136_p8, %s297_s20), 7  ;;  %v157_v8 = vld [vmem:[%s513_s19 + $0x30] sm:$0xff] }
  0x35   : > { %s303_s21 = smul.u32 24, %s605_s20 }
  0x36   : > { %173 = vrot.lane.b32.xlu1 %v154_v3, %s416_s9  ;;  %169 = vrot.lane.b32.xlu0 %v152_v4, %s416_s9 }
  0x37   : > { %s526_s24 = scalar_lea.vmem %s596_s1, %s303_s21 }
  0x38   : > { %143 = vst.msk [vmem:[%s526_s24] sm:$0x1] %vm142_vm0, %v417_v2  ;;  %147 = vst.msk [vmem:[%s526_s24 + $0x11] sm:$0x1] %vm142_vm0, %v417_v2 }
  0x39   : > { %144 = vst.msk [vmem:[%s526_s24 + $0x18] sm:$0x1] %vm142_vm0, %v417_v2  ;;  %148 = vst.msk [vmem:[%s526_s24 + $0x29] sm:$0x1] %vm142_vm0, %v417_v2 }
  0x3a   : > { %145 = vst.msk [vmem:[%s526_s24 + $0x30] sm:$0x1] %vm142_vm0, %v417_v2  ;;  %149 = vst.msk [vmem:[%s526_s24 + $0x41] sm:$0x1] %vm142_vm0, %v417_v2  ;;  %177 = vrot.lane.b32.xlu1 %v156_v5, %s416_s9  ;;  %175 = vrot.lane.b32.xlu0 %v155_v6, %s416_s9 }
  0x3b   : > { %146 = vst.msk [vmem:[%s526_s24 + $0x48] sm:$0x1] %vm142_vm0, %v417_v2  ;;  %150 = vst.msk [vmem:[%s526_s24 + $0x59] sm:$0x1] %vm142_vm0, %v417_v2 }
  0x3e   : > { %181 = vrot.lane.b32.xlu1 %v158_v7, %s416_s9  ;;  %179 = vrot.lane.b32.xlu0 %v157_v8, %s416_s9 }
  0xa4   : > { %v172_v9 = vpop.permute.xlu1 %171  ;;  %v168_v10 = vpop.permute.xlu0 %167 }
  0xa5   : > { %v194_v11 = vsel %vm191_vm1, 0.0, %v172_v9  ;;  %v192_v12 = vsel %vm191_vm1, 0.0, %v168_v10 }
  0xa6   : > { %v203_v13 = vsel %vm200_vm2, %v194_v11, 0.0  ;;  %v201_v14 = vsel %vm200_vm2, %v192_v12, 0.0 }
  0xa7   : > { %210 = vst.msk [vmem:[%s526_s24 + $0x1] sm:$0xff] %vm209_vm3, %v201_v14  ;;  %212 = vst.msk [vmem:[%s526_s24 + $0x19] sm:$0xff] %vm209_vm3, %v203_v13 }
  0xa8   : > { %v174_v15 = vpop.permute.xlu1 %173  ;;  %v170_v16 = vpop.permute.xlu0 %169 }
  0xa9   : > { %v195_v17 = vsel %vm191_vm1, 0.0, %v174_v15  ;;  %v193_v18 = vsel %vm191_vm1, 0.0, %v170_v16 }
  0xaa   : > { %v204_v19 = vsel %vm200_vm2, %v195_v17, 0.0  ;;  %v202_v20 = vsel %vm200_vm2, %v193_v18, 0.0 }
  0xab   : > { %211 = vst.msk [vmem:[%s526_s24 + $0x9] sm:$0xff] %vm209_vm3, %v202_v20  ;;  %213 = vst.msk [vmem:[%s526_s24 + $0x21] sm:$0xff] %vm209_vm3, %v204_v19 }
  0xac   : > { %v178_v21 = vpop.permute.xlu1 %177  ;;  %v176_v22 = vpop.permute.xlu0 %175 }
  0xad   : > { %v197_v23 = vsel %vm191_vm1, 0.0, %v178_v21  ;;  %v196_v24 = vsel %vm191_vm1, 0.0, %v176_v22 }
  0xae   : > { %v206_v25 = vsel %vm200_vm2, %v197_v23, 0.0  ;;  %v205_v26 = vsel %vm200_vm2, %v196_v24, 0.0 }
  0xaf   : > { %215 = vst.msk [vmem:[%s526_s24 + $0x39] sm:$0xff] %vm209_vm3, %v206_v25  ;;  %214 = vst.msk [vmem:[%s526_s24 + $0x31] sm:$0xff] %vm209_vm3, %v205_v26 }
  0xb0   : > { %v182_v27 = vpop.permute.xlu1 %181  ;;  %v180_v28 = vpop.permute.xlu0 %179 }
  0xb1   : > { %v199_v29 = vsel %vm191_vm1, 0.0, %v182_v27  ;;  %v198_v30 = vsel %vm191_vm1, 0.0, %v180_v28 }
  0xb2   : > { %v208_v31 = vsel %vm200_vm2, %v199_v29, 0.0  ;;  %v207_v32 = vsel %vm200_vm2, %v198_v30, 0.0 }
  0xb3   : > { %217 = vst.msk [vmem:[%s526_s24 + $0x51] sm:$0xff] %vm209_vm3, %v208_v31  ;;  %216 = vst.msk [vmem:[%s526_s24 + $0x49] sm:$0xff] %vm209_vm3, %v207_v32 }
  0xb4 PF: > { %p11_p7 = scmp.ge.s32.totalorder %s448_s11, 4   ;;  %s600_s6 = smov %s403_s7 }
  0xb5   : > { %s601_s7 = smov %s407_s8  ;;  %s602_s8 = smov %s458_s14 }
  0xb6   : > { %s603_s9 = smov %s448_s11  ;;  %13 = sbr.rel (!%p11_p7) target bundleno = 3 (0x3), region = 64 }
  0xbd   :  { %242 = vsyncpa [#allocation3], 1 }
  0xbe   :  { %244 = vsyncpa [#allocation3 + $0x1], 1 }

</bundles_post_ra>
